<compile_context>
chip_gen: v7x
topology: tpu7x:2x2x1
jax: 0.10.0
libtpu: 0.0.40
codegen_flags: <defaults>
</compile_context>

<pallas_src>
import functools
import math

import jax
import jax.numpy as jnp
from jax.experimental import pallas as pl
from jax.experimental.pallas import tpu as pltpu

LN_EPS = 1e-5  # torch.nn.LayerNorm default


def _gelu(x):
    # tanh-approximate GELU (see TODO above); used by kernels AND the reference.
    c = math.sqrt(2.0 / math.pi)
    return 0.5 * x * (1.0 + jnp.tanh(c * (x + 0.044715 * x * x * x)))


def _ln_math(x, g, b):
    mean = jnp.mean(x, axis=-1, keepdims=True)
    cent = x - mean
    var = jnp.mean(cent * cent, axis=-1, keepdims=True)
    return cent * jax.lax.rsqrt(var + LN_EPS) * g + b


# ---------------------------------------------------------------------------
# Fused BERT embedding: 3-way data-dependent row gather + sum + LayerNorm.
# ---------------------------------------------------------------------------
def _embed_ln_kernel(_tok_ids, _typ_ids, _pos_ids,
                     tok_ref, typ_ref, pos_ref, g_ref, b_ref, out_ref):
    # tok/typ/pos_ref: (1, 1, E) rows gathered by the data-dependent BlockSpecs.
    x = tok_ref[...] + typ_ref[...] + pos_ref[...]
    out_ref[...] = _ln_math(x, g_ref[...], b_ref[...]).astype(out_ref.dtype)


def bert_embedding_forward(input_ids, token_type_ids,
                           tok_table, typ_table, pos_table, gamma, beta):
    """input_ids/token_type_ids: (B, S) int -> (B, S, E) f32 (LayerNorm'ed)."""
    B, S = input_ids.shape
    V, E = tok_table.shape
    T = typ_table.shape[0]
    P = pos_table.shape[0]
    N = B * S

    # Scalar-prefetch ids (SMEM).  Clamp so a bad id can never be an OOB DMA.
    tok_ids = jnp.clip(input_ids.reshape(N).astype(jnp.int32), 0, V - 1)
    typ_ids = jnp.clip(token_type_ids.reshape(N).astype(jnp.int32), 0, T - 1)
    pos_ids = jnp.clip(jnp.tile(jnp.arange(S, dtype=jnp.int32), B), 0, P - 1)

    # Tables as (V, 1, E): the block's trailing two dims (1, E) equal the full
    # array dims, so the (8,128) tiling rule is satisfied for any E.
    tok3 = tok_table.reshape(V, 1, E)
    typ3 = typ_table.reshape(T, 1, E)
    pos3 = pos_table.reshape(P, 1, E)
    g3 = gamma.reshape(1, 1, E)
    b3 = beta.reshape(1, 1, E)

    row = (1, 1, E)
    grid_spec = pltpu.PrefetchScalarGridSpec(
        num_scalar_prefetch=3,
        grid=(N,),
        in_specs=[
            pl.BlockSpec(row, lambda i, tok, typ, pos: (tok[i], 0, 0)),
            pl.BlockSpec(row, lambda i, tok, typ, pos: (typ[i], 0, 0)),
            pl.BlockSpec(row, lambda i, tok, typ, pos: (pos[i], 0, 0)),
            pl.BlockSpec(row, lambda i, tok, typ, pos: (0, 0, 0)),
            pl.BlockSpec(row, lambda i, tok, typ, pos: (0, 0, 0)),
        ],
        out_specs=pl.BlockSpec(row, lambda i, tok, typ, pos: (i, 0, 0)),
    )
    out = pl.pallas_call(
        _embed_ln_kernel,
        out_shape=jax.ShapeDtypeStruct((N, 1, E), tok_table.dtype),
        grid_spec=grid_spec,
        compiler_params=pltpu.CompilerParams(
            dimension_semantics=("parallel",)),
    )(tok_ids, typ_ids, pos_ids, tok3, typ3, pos3, g3, b3)
    return out.reshape(B, S, E)


# ---------------------------------------------------------------------------
# Linear (matmul + bias, optional fused GELU), tiled over (M, Nout).
# ---------------------------------------------------------------------------
def _linear_kernel(x_ref, w_ref, b_ref, o_ref, *, activation):
    y = jnp.dot(x_ref[...], w_ref[...], preferred_element_type=jnp.float32)
    y = y + b_ref[...]
    if activation == "gelu":
        y = _gelu(y)
    o_ref[...] = y.astype(o_ref.dtype)


def _pick_tile(dim, preferred=128):
    return preferred if dim % preferred == 0 else dim


def linear(x, w, b, activation=None):
    """x: (..., K) @ w: (K, Nout) + b: (Nout,), optional fused GELU."""
    K, Nout = w.shape
    lead = x.shape[:-1]
    M = math.prod(lead)
    x2 = x.reshape(M, K)
    b2 = b.reshape(1, Nout)
    tm = _pick_tile(M)
    tn = _pick_tile(Nout)
    out = pl.pallas_call(
        functools.partial(_linear_kernel, activation=activation),
        out_shape=jax.ShapeDtypeStruct((M, Nout), x.dtype),
        grid=(M // tm, Nout // tn),
        in_specs=[
            pl.BlockSpec((tm, K), lambda i, j: (i, 0)),
            pl.BlockSpec((K, tn), lambda i, j: (0, j)),
            pl.BlockSpec((1, tn), lambda i, j: (0, j)),
        ],
        out_specs=pl.BlockSpec((tm, tn), lambda i, j: (i, j)),
        compiler_params=pltpu.CompilerParams(
            dimension_semantics=("parallel", "parallel")),
    )(x2, w, b2)
    return out.reshape(*lead, Nout)


# ---------------------------------------------------------------------------
# LayerNorm (optionally fused with a residual add).
# ---------------------------------------------------------------------------
def _layernorm_kernel(x_ref, g_ref, b_ref, o_ref):
    o_ref[...] = _ln_math(x_ref[...], g_ref[...], b_ref[...]).astype(o_ref.dtype)


def _add_layernorm_kernel(x_ref, r_ref, g_ref, b_ref, o_ref):
    o_ref[...] = _ln_math(x_ref[...] + r_ref[...],
                          g_ref[...], b_ref[...]).astype(o_ref.dtype)


def layernorm(x, gamma, beta, residual=None):
    lead = x.shape[:-1]
    E = x.shape[-1]
    M = math.prod(lead)
    tm = _pick_tile(M)
    x2 = x.reshape(M, E)
    g2 = gamma.reshape(1, E)
    b2 = beta.reshape(1, E)
    row_spec = pl.BlockSpec((tm, E), lambda i: (i, 0))
    const_spec = pl.BlockSpec((1, E), lambda i: (0, 0))
    if residual is None:
        kernel = _layernorm_kernel
        in_specs = [row_spec, const_spec, const_spec]
        args = (x2, g2, b2)
    else:
        kernel = _add_layernorm_kernel
        in_specs = [row_spec, row_spec, const_spec, const_spec]
        args = (x2, residual.reshape(M, E), g2, b2)
    out = pl.pallas_call(
        kernel,
        out_shape=jax.ShapeDtypeStruct((M, E), x.dtype),
        grid=(M // tm,),
        in_specs=in_specs,
        out_specs=row_spec,
        compiler_params=pltpu.CompilerParams(
            dimension_semantics=("parallel",)),
    )(*args)
    return out.reshape(*lead, E)


# ---------------------------------------------------------------------------
# Multi-headed self attention (softmax over keys, as in the reference module).
# ---------------------------------------------------------------------------
def _attention_kernel(q_ref, k_ref, v_ref, o_ref, *, scale):
    q = q_ref[...]
    k = k_ref[...]
    v = v_ref[...]
    s = jnp.einsum("bqd,bkd->bqk", q, k,
                   preferred_element_type=jnp.float32) * scale
    s = s - jnp.max(s, axis=-1, keepdims=True)
    p = jnp.exp(s)
    p = p / jnp.sum(p, axis=-1, keepdims=True)
    o = jnp.einsum("bqk,bkd->bqd", p, v, preferred_element_type=jnp.float32)
    o_ref[...] = o.astype(o_ref.dtype)


def multi_head_attention(x, blk, num_heads):
    B, S, E = x.shape
    Dh = E // num_heads
    q = linear(x, blk["wq"], blk["bq"])
    k = linear(x, blk["wk"], blk["bk"])
    v = linear(x, blk["wv"], blk["bv"])

    def split_heads(t):  # 'b s (h d) -> (b h) s d'
        return (t.reshape(B, S, num_heads, Dh)
                 .transpose(0, 2, 1, 3)
                 .reshape(B * num_heads, S, Dh))

    qh, kh, vh = split_heads(q), split_heads(k), split_heads(v)
    spec = pl.BlockSpec((1, S, Dh), lambda i: (i, 0, 0))
    oh = pl.pallas_call(
        functools.partial(_attention_kernel, scale=1.0 / math.sqrt(Dh)),
        out_shape=jax.ShapeDtypeStruct((B * num_heads, S, Dh), x.dtype),
        grid=(B * num_heads,),
        in_specs=[spec, spec, spec],
        out_specs=spec,
        compiler_params=pltpu.CompilerParams(
            dimension_semantics=("parallel",)),
    )(qh, kh, vh)
    o = (oh.reshape(B, num_heads, S, Dh)
            .transpose(0, 2, 1, 3)
            .reshape(B, S, E))
    return linear(o, blk["wo"], blk["bo"])


# ---------------------------------------------------------------------------
# Full BERT forward (dropout = identity, eval mode).
# ---------------------------------------------------------------------------
def bert_forward(params, input_ids, *, num_heads):
    token_type_ids = jnp.zeros_like(input_ids)
    x = bert_embedding_forward(input_ids, token_type_ids,
                               params["tok_emb"], params["typ_emb"],
                               params["pos_emb"],
                               params["emb_ln_g"], params["emb_ln_b"])
    for blk in params["blocks"]:
        attn = multi_head_attention(x, blk, num_heads)
        x = layernorm(attn, blk["ln1_g"], blk["ln1_b"], residual=x)
        m = linear(x, blk["w1"], blk["b1"], activation="gelu")
        m = linear(m, blk["w2"], blk["b2"])
        x = layernorm(m, blk["ln2_g"], blk["ln2_b"], residual=x)
    h = linear(x, params["w_lin"], params["b_lin"], activation="gelu")
    h = layernorm(h, params["final_ln_g"], params["final_ln_b"])
    return linear(h, params["w_unembed"], params["b_unembed"])


# ---------------------------------------------------------------------------
# Pure-JAX reference (same math, same gelu approximation).
# ---------------------------------------------------------------------------
def _ref_layernorm(x, g, b):
    mean = x.mean(-1, keepdims=True)
    var = ((x - mean) ** 2).mean(-1, keepdims=True)
    return (x - mean) / jnp.sqrt(var + LN_EPS) * g + b


def bert_forward_reference(params, input_ids, *, num_heads):
    B, S = input_ids.shape
    E = params["tok_emb"].shape[1]
    tok = params["tok_emb"][input_ids]
    typ = params["typ_emb"][jnp.zeros_like(input_ids)]
    pos = params["pos_emb"][jnp.arange(S)][None, :, :]
    x = _ref_layernorm(tok + typ + pos, params["emb_ln_g"], params["emb_ln_b"])
    for blk in params["blocks"]:
        q = x @ blk["wq"] + blk["bq"]
        k = x @ blk["wk"] + blk["bk"]
        v = x @ blk["wv"] + blk["bv"]

        def split(t):
            return t.reshape(B, S, num_heads, -1).transpose(0, 2, 1, 3)

        qh, kh, vh = split(q), split(k), split(v)
        scores = jnp.einsum("bhqd,bhkd->bhqk", qh, kh) / math.sqrt(qh.shape[-1])
        probs = jax.nn.softmax(scores, axis=-1)
        oh = jnp.einsum("bhqk,bhkd->bhqd", probs, vh)
        o = oh.transpose(0, 2, 1, 3).reshape(B, S, E)
        attn = o @ blk["wo"] + blk["bo"]
        x = _ref_layernorm(x + attn, blk["ln1_g"], blk["ln1_b"])
        m = _gelu(x @ blk["w1"] + blk["b1"]) @ blk["w2"] + blk["b2"]
        x = _ref_layernorm(x + m, blk["ln2_g"], blk["ln2_b"])
    h = _gelu(x @ params["w_lin"] + params["b_lin"])
    h = _ref_layernorm(h, params["final_ln_g"], params["final_ln_b"])
    return h @ params["w_unembed"] + params["b_unembed"]


# ---------------------------------------------------------------------------
# Parameter construction (deterministic, stand-in for the torch Parameters).
# ---------------------------------------------------------------------------
def init_bert_params(key, *, vocab_size, hidden_size, max_position_embeddings,
                     type_vocab_size, intermediate_size, num_layers):
    keys = jax.random.split(key, 8 + num_layers)

    def dense(k, fin, fout):
        kw, kb = jax.random.split(k)
        w = jax.random.normal(kw, (fin, fout), jnp.float32) / math.sqrt(fin)
        b = 0.02 * jax.random.normal(kb, (fout,), jnp.float32)
        return w, b

    def ln(k, dim):
        kg, kb = jax.random.split(k)
        g = 1.0 + 0.1 * jax.random.normal(kg, (dim,), jnp.float32)
        b = 0.1 * jax.random.normal(kb, (dim,), jnp.float32)
        return g, b

    p = {}
    p["tok_emb"] = jax.random.normal(keys[0], (vocab_size, hidden_size), jnp.float32)
    p["typ_emb"] = jax.random.normal(keys[1], (type_vocab_size, hidden_size), jnp.float32)
    p["pos_emb"] = jax.random.normal(keys[2], (max_position_embeddings, hidden_size), jnp.float32)
    p["emb_ln_g"], p["emb_ln_b"] = ln(keys[3], hidden_size)

    blocks = []
    for layer in range(num_layers):
        lk = jax.random.split(keys[8 + layer], 8)
        blk = {}
        blk["wq"], blk["bq"] = dense(lk[0], hidden_size, hidden_size)
        blk["wk"], blk["bk"] = dense(lk[1], hidden_size, hidden_size)
        blk["wv"], blk["bv"] = dense(lk[2], hidden_size, hidden_size)
        blk["wo"], blk["bo"] = dense(lk[3], hidden_size, hidden_size)
        blk["ln1_g"], blk["ln1_b"] = ln(lk[4], hidden_size)
        blk["w1"], blk["b1"] = dense(lk[5], hidden_size, intermediate_size)
        blk["w2"], blk["b2"] = dense(lk[6], intermediate_size, hidden_size)
        blk["ln2_g"], blk["ln2_b"] = ln(lk[7], hidden_size)
        blocks.append(blk)
    p["blocks"] = blocks

    p["w_lin"], p["b_lin"] = dense(keys[4], hidden_size, hidden_size)
    p["final_ln_g"], p["final_ln_b"] = ln(keys[5], hidden_size)
    p["w_unembed"], p["b_unembed"] = dense(keys[6], hidden_size, vocab_size)
    return p


if __name__ == "__main__":
    vocab_size = 64
    hidden_size = 32
    max_position_embeddings = 16
    type_vocab_size = 2
    intermediate_size = 64
    num_heads = 2
    num_layers = 2
    batch, seq = 2, 8

    root = jax.random.PRNGKey(0)
    k_params, k_ids = jax.random.split(root)
    params = init_bert_params(
        k_params, vocab_size=vocab_size, hidden_size=hidden_size,
        max_position_embeddings=max_position_embeddings,
        type_vocab_size=type_vocab_size,
        intermediate_size=intermediate_size, num_layers=num_layers)
    input_ids = jax.random.randint(k_ids, (batch, seq), 0, vocab_size,
                                   dtype=jnp.int32)

    # Run the Pallas forward pass.
    logits = bert_forward(params, input_ids, num_heads=num_heads)
    logits = jax.block_until_ready(logits)
    assert logits.shape == (batch, seq, vocab_size)

    # Tight check on the gather + LayerNorm embedding kernel (pure DMA path).
    emb_out = bert_embedding_forward(
        input_ids, jnp.zeros_like(input_ids),
        params["tok_emb"], params["typ_emb"], params["pos_emb"],
        params["emb_ln_g"], params["emb_ln_b"])
    emb_ref = _ref_layernorm(
        params["tok_emb"][input_ids]
        + params["typ_emb"][jnp.zeros_like(input_ids)]
        + params["pos_emb"][jnp.arange(seq)][None, :, :],
        params["emb_ln_g"], params["emb_ln_b"])
    assert float(jnp.max(jnp.abs(emb_out - emb_ref))) < 1e-5, "embedding mismatch"

    # End-to-end check against the pure-JAX reference.
    with jax.default_matmul_precision("highest"):
        ref_logits = bert_forward_reference(params, input_ids, num_heads=num_heads)
    max_err = float(jnp.max(jnp.abs(logits - ref_logits)))
    assert max_err < 2e-2, f"forward mismatch vs reference: {max_err}"

    print("KERNEL_OK")
</pallas_src>

<mosaic_0001>
module attributes {stable_mosaic.version = 11 : i64} {
  func.func @_embed_ln_kernel(%arg0: i32, %arg1: memref<16xi32, #tpu.memory_space<smem>>, %arg2: memref<16xi32, #tpu.memory_space<smem>>, %arg3: memref<16xi32, #tpu.memory_space<smem>>, %arg4: memref<1x1x32xf32, #tpu.memory_space<vmem>>, %arg5: memref<1x1x32xf32, #tpu.memory_space<vmem>>, %arg6: memref<1x1x32xf32, #tpu.memory_space<vmem>>, %arg7: memref<1x1x32xf32, #tpu.memory_space<vmem>>, %arg8: memref<1x1x32xf32, #tpu.memory_space<vmem>>, %arg9: memref<1x1x32xf32, #tpu.memory_space<vmem>>) attributes {dimension_semantics = [#tpu.dimension_semantics<parallel>], iteration_bounds = array<i64: 16>, scalar_prefetch = 3 : i64, scratch_operands = 0 : i64, tpu.core_type = #tpu.core_type<tc>, window_params = [{transform_indices = @transform_0, window_bounds = array<i64: 1, 1, 32>}, {transform_indices = @transform_1, window_bounds = array<i64: 1, 1, 32>}, {transform_indices = @transform_2, window_bounds = array<i64: 1, 1, 32>}, {pipeline_mode = #tpu.pipeline_mode<synchronous>, transform_indices = @transform_3, window_bounds = array<i64: 1, 1, 32>}, {pipeline_mode = #tpu.pipeline_mode<synchronous>, transform_indices = @transform_4, window_bounds = array<i64: 1, 1, 32>}, {transform_indices = @transform_5, window_bounds = array<i64: 1, 1, 32>}]} {
    %c0 = arith.constant 0 : index
    %c0_0 = arith.constant 0 : index
    %c0_1 = arith.constant 0 : index
    %0 = vector.load %arg4[%c0, %c0_0, %c0_1] : memref<1x1x32xf32, #tpu.memory_space<vmem>>, vector<1x1x32xf32>
    %c0_2 = arith.constant 0 : index
    %c0_3 = arith.constant 0 : index
    %c0_4 = arith.constant 0 : index
    %1 = vector.load %arg5[%c0_2, %c0_3, %c0_4] : memref<1x1x32xf32, #tpu.memory_space<vmem>>, vector<1x1x32xf32>
    %2 = arith.addf %0, %1 : vector<1x1x32xf32>
    %c0_5 = arith.constant 0 : index
    %c0_6 = arith.constant 0 : index
    %c0_7 = arith.constant 0 : index
    %3 = vector.load %arg6[%c0_5, %c0_6, %c0_7] : memref<1x1x32xf32, #tpu.memory_space<vmem>>, vector<1x1x32xf32>
    %4 = arith.addf %2, %3 : vector<1x1x32xf32>
    %c0_8 = arith.constant 0 : index
    %c0_9 = arith.constant 0 : index
    %c0_10 = arith.constant 0 : index
    %5 = vector.load %arg7[%c0_8, %c0_9, %c0_10] : memref<1x1x32xf32, #tpu.memory_space<vmem>>, vector<1x1x32xf32>
    %c0_11 = arith.constant 0 : index
    %c0_12 = arith.constant 0 : index
    %c0_13 = arith.constant 0 : index
    %6 = vector.load %arg8[%c0_11, %c0_12, %c0_13] : memref<1x1x32xf32, #tpu.memory_space<vmem>>, vector<1x1x32xf32>
    %cst = arith.constant dense<0.000000e+00> : vector<1x1xf32>
    %7 = vector.multi_reduction <add>, %4, %cst [2] : vector<1x1x32xf32> to vector<1x1xf32>
    %8 = vector.shape_cast %7 : vector<1x1xf32> to vector<1x1x1xf32>
    %cst_14 = arith.constant 3.200000e+01 : f32
    %9 = vector.broadcast %cst_14 : f32 to vector<1x1x1xf32>
    %10 = arith.divf %8, %9 : vector<1x1x1xf32>
    %11 = vector.broadcast %10 : vector<1x1x1xf32> to vector<1x1x32xf32>
    %12 = arith.subf %4, %11 : vector<1x1x32xf32>
    %13 = arith.mulf %12, %12 : vector<1x1x32xf32>
    %cst_15 = arith.constant dense<0.000000e+00> : vector<1x1xf32>
    %14 = vector.multi_reduction <add>, %13, %cst_15 [2] : vector<1x1x32xf32> to vector<1x1xf32>
    %15 = vector.shape_cast %14 : vector<1x1xf32> to vector<1x1x1xf32>
    %cst_16 = arith.constant 3.200000e+01 : f32
    %16 = vector.broadcast %cst_16 : f32 to vector<1x1x1xf32>
    %17 = arith.divf %15, %16 : vector<1x1x1xf32>
    %cst_17 = arith.constant 9.99999974E-6 : f32
    %18 = vector.broadcast %cst_17 : f32 to vector<1x1x1xf32>
    %19 = arith.addf %17, %18 : vector<1x1x1xf32>
    %20 = math.rsqrt %19 : vector<1x1x1xf32>
    %21 = vector.broadcast %20 : vector<1x1x1xf32> to vector<1x1x32xf32>
    %22 = arith.mulf %12, %21 : vector<1x1x32xf32>
    %23 = arith.mulf %22, %5 : vector<1x1x32xf32>
    %24 = arith.addf %23, %6 : vector<1x1x32xf32>
    %c0_18 = arith.constant 0 : index
    %c0_19 = arith.constant 0 : index
    %c0_20 = arith.constant 0 : index
    %25 = vector.load %arg9[%c0_18, %c0_19, %c0_20] : memref<1x1x32xf32, #tpu.memory_space<vmem>>, vector<1x1x32xf32>
    tpu.vector_store %arg9[%c0_18, %c0_19, %c0_20], %24 {strides = array<i32>} : memref<1x1x32xf32, #tpu.memory_space<vmem>>, vector<1x1x32xf32>,
    return
  }
  func.func @transform_0(%arg0: i32, %arg1: memref<16xi32, #tpu.memory_space<smem>>, %arg2: memref<16xi32, #tpu.memory_space<smem>>, %arg3: memref<16xi32, #tpu.memory_space<smem>>) -> (i32, i32, i32) {
    %0 = arith.index_cast %arg0 : i32 to index
    %1 = memref.load %arg1[%0] : memref<16xi32, #tpu.memory_space<smem>>
    %c0_i32 = arith.constant 0 : i32
    %c0_i32_0 = arith.constant 0 : i32
    %c0_i32_1 = arith.constant 0 : i32
    return %1, %c0_i32, %c0_i32_0 : i32, i32, i32
  }
  func.func @transform_1(%arg0: i32, %arg1: memref<16xi32, #tpu.memory_space<smem>>, %arg2: memref<16xi32, #tpu.memory_space<smem>>, %arg3: memref<16xi32, #tpu.memory_space<smem>>) -> (i32, i32, i32) {
    %0 = arith.index_cast %arg0 : i32 to index
    %1 = memref.load %arg2[%0] : memref<16xi32, #tpu.memory_space<smem>>
    %c0_i32 = arith.constant 0 : i32
    %c0_i32_0 = arith.constant 0 : i32
    %c0_i32_1 = arith.constant 0 : i32
    return %1, %c0_i32, %c0_i32_0 : i32, i32, i32
  }
  func.func @transform_2(%arg0: i32, %arg1: memref<16xi32, #tpu.memory_space<smem>>, %arg2: memref<16xi32, #tpu.memory_space<smem>>, %arg3: memref<16xi32, #tpu.memory_space<smem>>) -> (i32, i32, i32) {
    %0 = arith.index_cast %arg0 : i32 to index
    %1 = memref.load %arg3[%0] : memref<16xi32, #tpu.memory_space<smem>>
    %c0_i32 = arith.constant 0 : i32
    %c0_i32_0 = arith.constant 0 : i32
    %c0_i32_1 = arith.constant 0 : i32
    return %1, %c0_i32, %c0_i32_0 : i32, i32, i32
  }
  func.func @transform_3(%arg0: i32, %arg1: memref<16xi32, #tpu.memory_space<smem>>, %arg2: memref<16xi32, #tpu.memory_space<smem>>, %arg3: memref<16xi32, #tpu.memory_space<smem>>) -> (i32, i32, i32) {
    %c0_i32 = arith.constant 0 : i32
    %c0_i32_0 = arith.constant 0 : i32
    %c0_i32_1 = arith.constant 0 : i32
    %c0_i32_2 = arith.constant 0 : i32
    return %c0_i32, %c0_i32_0, %c0_i32_1 : i32, i32, i32
  }
  func.func @transform_4(%arg0: i32, %arg1: memref<16xi32, #tpu.memory_space<smem>>, %arg2: memref<16xi32, #tpu.memory_space<smem>>, %arg3: memref<16xi32, #tpu.memory_space<smem>>) -> (i32, i32, i32) {
    %c0_i32 = arith.constant 0 : i32
    %c0_i32_0 = arith.constant 0 : i32
    %c0_i32_1 = arith.constant 0 : i32
    %c0_i32_2 = arith.constant 0 : i32
    return %c0_i32, %c0_i32_0, %c0_i32_1 : i32, i32, i32
  }
  func.func @transform_5(%arg0: i32, %arg1: memref<16xi32, #tpu.memory_space<smem>>, %arg2: memref<16xi32, #tpu.memory_space<smem>>, %arg3: memref<16xi32, #tpu.memory_space<smem>>) -> (i32, i32, i32) {
    %c0_i32 = arith.constant 0 : i32
    %c0_i32_0 = arith.constant 0 : i32
    %c0_i32_1 = arith.constant 0 : i32
    return %arg0, %c0_i32, %c0_i32_0 : i32, i32, i32
  }
}

</mosaic_0001>

<bundles_post_ra>
// kernel: tpu_custom_call.1
= control target key start
LH: loop header
LB: loop body
LE: loop exit
PB: predicated region body
PF: predicated region fallthrough
CT: control target
= control target key end

     0   :  { %s717_s0 = inlined_call_operand.vmem [shape: s32[16], index: 0, kind: input, shape index: {}]   ;;  %s718_s3 = inlined_call_operand.vmem [shape: f32[64,1,32], index: 3, kind: input, shape index: {}]   ;;  %s719_s4 = inlined_call_operand.vmem [shape: f32[2,1,32], index: 4, kind: input, shape index: {}]   ;;  %s720_s5 = inlined_call_operand.vmem [shape: f32[16,1,32], index: 5, kind: input, shape index: {}]   ;;  %s721_s6 = inlined_call_operand.vmem [shape: f32[1,1,32], index: 6, kind: input, shape index: {}]   ;;  %s722_s7 = inlined_call_operand.vmem [shape: f32[1,1,32], index: 7, kind: input, shape index: {}]   ;;  %s723_s8 = inlined_call_operand.hbm [shape: f32[16,1,32], index: 8, kind: output, shape index: {}]   ;;  %s724_s1 = inlined_call_operand.vmem [shape: s32[16], index: 1, kind: input, shape index: {}]   ;;  %s725_s2 = inlined_call_operand.vmem [shape: s32[16], index: 2, kind: input, shape index: {}]  }
   0x1   :  { %s13_s29 = sshll.u32 %s717_s0, 4  ;;  %s17_s10 = sshll.u32 %s724_s1, 4  ;;  %s14_s29 = int_to_ptr.vmem [resolvable:$true] %s13_s29  ;;  %s18_s10 = int_to_ptr.vmem [resolvable:$true] %s17_s10 }
   0x2   :  { %s441_s11 = scalar_lea.vmem %s14_s29, 16  ;;  %p446_p1 = scmp.lt.s32.totalorder %s14_s29, %s14_s29 }
   0x3   :  { %p442_p0 = scmp.ne.s32.totalorder %s14_s29, %s441_s11  ;;  %p447_p2 = scmp.lt.s32.totalorder %s441_s11, %s441_s11 }
   0x5   :  { %p448_p3 = por %p447_p2, %p446_p1 }
   0x7   :  { %p449_p4 = pnand %p448_p3, %p442_p0 }
   0x9   :  { %452 = shalt.err (!%p449_p4)  }
   0xa   :  { %s543_s12 = smov [#allocation3]   ;;  %s453_s13 = scalar_lea.vmem %s18_s10, 16 }
   0xb   :  { %16 = dma.vmem_to_smem %s14_s29, 16, %s543_s12, [#allocation2] }
   0xc   :  { %p454_p5 = scmp.ne.s32.totalorder %s18_s10, %s453_s13  ;;  %p458_p6 = scmp.lt.s32.totalorder %s18_s10, %s18_s10 }
   0xd   :  { %p459_p7 = scmp.lt.s32.totalorder %s453_s13, %s453_s13 }
   0xf   :  { %p460_p8 = por %p459_p7, %p458_p6 }
  0x11   :  { %p461_p9 = pnand %p460_p8, %p454_p5 }
  0x13   :  { %464 = shalt.err (!%p461_p9)  }
  0x14   :  { %s544_s0 = smov [#allocation4]   ;;  %s21_s15 = sshll.u32 %s725_s2, 4  ;;  %s22_s15 = int_to_ptr.vmem [resolvable:$true] %s21_s15 }
  0x15   :  { %20 = dma.vmem_to_smem %s18_s10, 16, %s544_s0, [#allocation2] }
  0x16   :  { %s465_s16 = scalar_lea.vmem %s22_s15, 16  ;;  %p470_p11 = scmp.lt.s32.totalorder %s22_s15, %s22_s15 }
  0x17   :  { %p466_p10 = scmp.ne.s32.totalorder %s22_s15, %s465_s16  ;;  %p471_p12 = scmp.lt.s32.totalorder %s465_s16, %s465_s16 }
  0x19   :  { %p472_p13 = por %p471_p12, %p470_p11 }
  0x1b   :  { %p473_p0 = pnand %p472_p13, %p466_p10 }
  0x1d   :  { %476 = shalt.err (!%p473_p0)  }
  0x1e   :  { %s545_s17 = smov [#allocation5]  }
  0x1f   :  { %24 = dma.vmem_to_smem %s22_s15, 16, %s545_s17, [#allocation2] }
  0x20   :  { %521 = dma.done.wait [#allocation2], 48 }
  0x21   :  { %522 = vsyncadd [#allocation2], 4294967248 }
  0x22   :  { %26 = sfence }
  0x23   :  { %27 = vsyncpa [#allocation7], 0 }
  0x24   :  { %29 = vsyncpa [#allocation7 + $0x1], 0  ;;  %s601_s18 = smov 0   ;;  %s603_s19 = smov 0  }
  0x25   :  { %s605_s2 = smov 0   ;;  %s607_s20 = smov 0  }
  0x26 LB: > { %s622_s21 = sadd.s32 4294967295, %s541_s20   ;;  %s390_s22 = sadd.s32 4294967294, %s541_s20   ;;  %s541_s20 = sphi %s607_s20, %s731_s20   ;;  %s537_s2 = sphi %s605_s2, %s730_s2   ;;  %s533_s19 = sphi %s603_s19, %s729_s19   ;;  %s529_s18 = sphi %s601_s18, %s728_s18  }
  0x27   : > { %s626_s23 = sadd.s32 1, %s541_s20   ;;  %s168_s24 = sadd.s32 1, %s537_s2 }
  0x28   : > { %s165_s25 = ssub.s32 %s541_s20, %s626_s23  ;;  %p178_p1 = scmp.ne.s32.totalorder %s537_s2, %s533_s19 }
  0x29   : > { %p166_p2 = scmp.eq.s32.totalorder %s165_s25, 0  ;;  %p179_p3 = scmp.eq.s32.totalorder %s622_s21, 15 }
  0x2a   : > { %p184_p4 = scmp.ne.s32.totalorder %s533_s19, %s529_s18  ;;  %p185_p5 = scmp.eq.s32.totalorder %s390_s22, 15 }
  0x2b   : > { %s637_s26 = scalar_select %p166_p2, %s537_s2, %s168_s24  }
  0x2c   : > { %p639_p6 = por %p179_p3, %p178_p1  ;;  %p643_p7 = por %p185_p5, %p184_p4 }
  0x2d   : > { %p393_p8 = scmp.ge.s32.totalorder %s541_s20, 1  ;;  %p233_p9 = scmp.lt.s32.totalorder %s541_s20, 17 }
  0x2f   : > { %p234_p10 = pnand %p393_p8, %p233_p9 }
  0x30   : > { %s267_s29 = sld [smem:[#allocation3 + %s622_s21]] (!%p234_p10)  ;;  %vm289_vm0 = vcmask (!%p234_p10), 253952   ;;  %s265_s17 = sand.u32 (!%p234_p10), 1, %s533_s19   ;;  %v287_v15 = vld [vmem:[%s721_s6] sm:$0x1] (!%p234_p10) }
  0x31   : > { %237 = sbr.rel (%p234_p10) target bundleno = 391 (0x187), region = 40  ;;  %s272_s30 = sld [smem:[#allocation4 + %s622_s21]] (!%p234_p10)  ;;  %v288_v17 = vld [vmem:[%s722_s7] sm:$0x1] (!%p234_p10) }
  0x32   : > { %s277_s9 = sld [smem:[#allocation5 + %s622_s21]] (!%p234_p10)  ;;  %s308_s0 = scalar_lea.sflag (!%p234_p10), [#allocation7], %s265_s17 }
  0x36   : > { %p268_p11 = scmp.lt.s32.totalorder (!%p234_p10), %s267_s29, 63 }
  0x37   : > { %p273_p12 = scmp.lt.s32.totalorder (!%p234_p10), %s272_s30, 1 }
  0x38   : > { %p278_p13 = scmp.lt.s32.totalorder %s277_s9, 15  ;;  %s733_s29 = smov (!%p268_p11, %s267_s29), 63 }
  0x39   : > { %s735_s30 = smov (!%p273_p12, %s272_s30), 1  ;;  %s270_s12 = scalar_lea.vmem %s718_s3, %s733_s29 }
  0x3a   : > { %s275_s1 = scalar_lea.vmem %s719_s4, %s735_s30  ;;  %v282_v0 = vld [vmem:[%s270_s12] sm:$0x1]  ;;  %s737_s9 = smov (!%p278_p13, %s277_s9), 15 }
  0x3b   : > { %v283_v1 = vld [vmem:[%s275_s1] sm:$0x1]  ;;  %s280_s16 = scalar_lea.vmem %s720_s5, %s737_s9  ;;  %s394_s30 = sshll.u32 %s622_s21, 4 }
  0x3c   : > { %v284_v2 = vadd.f32 %v283_v1, %v282_v0  ;;  %v285_v3 = vld [vmem:[%s280_s16] sm:$0x1]  ;;  %s266_s9 = scalar_lea.vmem [#allocation6], %s265_s17  ;;  %s674_s13 = scalar_lea.hbm %s723_s8, %s394_s30 }
  0x3d   : > { %s320_s10 = sshll.u32 %s266_s9, 4  ;;  %s546_s21 = smov [#allocation6]   ;;  %s676_s10 = int_to_ptr.vmem [resolvable:$true] %s320_s10 }
  0x3e   : > { %v286_v4 = vadd.f32 %v285_v3, %v284_v2  ;;  %s477_s1 = scalar_lea.vmem %s676_s10, 16  ;;  %s481_s14 = sshll.u32 %s546_s21, 4  ;;  %s482_s14 = int_to_ptr.vmem [resolvable:$false] %s481_s14 }
  0x3f   : > { %p478_p0 = scmp.ne.s32.totalorder %s676_s10, %s477_s1  ;;  %s483_s15 = scalar_lea.vmem %s482_s14, 32 }
  0x40   : > { %v290_v5 = vsel %vm289_vm0, %v286_v4, 0.0  ;;  %p484_p3 = scmp.lt.s32.totalorder %s676_s10, %s482_s14  ;;  %p485_p4 = scmp.lt.s32.totalorder %s483_s15, %s477_s1 }
  0x41   : > { %291 = vadd.xlane.f32.xlu0 %v290_v5  ;;  %p479_p1 = pnand %p478_p0, %p639_p6 }
  0x42   : > { %p486_p5 = por %p485_p4, %p484_p3 }
  0x43   : > { %p480_p2 = pneg %p479_p1 }
  0x45   : > { %p487_p8 = pnand %p486_p5, %p480_p2 }
  0xce   : > { %v292_v6 = vpop.xlane.xlu0 %291 }
  0xcf   : > { %v294_v7 = vmul.f32 0.03125, %v292_v6 }
  0xd1   : > { %v295_v8 = vsub.f32 %v286_v4, %v294_v7 }
  0xd3   : > { %v296_v9 = vmul.f32 %v295_v8, %v295_v8 }
  0xd5   : > { %v297_v10 = vsel %vm289_vm0, %v296_v9, 0.0 }
  0xd6   : > { %298 = vadd.xlane.f32.xlu0 %v297_v10 }
 0x163   : > { %v299_v11 = vpop.xlane.xlu0 %298 }
 0x164   : > { %v300_v12 = vmul.f32 0.03125, %v299_v11 }
 0x166   : > { %v301_v13 = vadd.f32 1e-05, %v300_v12 }
 0x168   : > { %439 = vrsqrt.f32 %v301_v13 }
 0x172   : > { %v440_v14 = vpop.eup %439 }
 0x173   : > { %v303_v16 = vmul.f32 %v440_v14, %v295_v8 }
 0x175   : > { %v304_v18 = vmul.f32 %v303_v16, %v287_v15 }
 0x177   : > { %v305_v19 = vadd.f32 %v304_v18, %v288_v17 }
 0x179   : > { %306 = vst.msk [vmem:[%s266_s9] sm:$0x1] %vm289_vm0, %v305_v19 }
 0x17a   : > { %490 = shalt.err (!%p487_p8)
}
 0x17b   : > { %s491_s16 = scalar_lea.hbm %s674_s13, 16  ;;  %s495_s24 = scalar_lea.hbm %s723_s8, 256 }
 0x17c   : > { %p492_p9 = scmp.ne.s32.totalorder %s674_s13, %s491_s16  ;;  %p496_p12 = scmp.lt.u32.totalorder %s674_s13, %s723_s8 }
 0x17d   : > { %p497_p13 = scmp.lt.u32.totalorder %s495_s24, %s491_s16  ;;  %p499_p1 = scmp.lt.u32.totalorder %s491_s16, %s674_s13 }
 0x17e   : > { %p493_p10 = pnand %p492_p9, %p639_p6 }
 0x17f   : > { %p498_p0 = por %p497_p13, %p496_p12 }
 0x180   : > { %p494_p11 = pneg %p493_p10 }
 0x181   : > { %p500_p2 = por %p499_p1, %p498_p0 }
 0x183   : > { %p501_p3 = pnand %p500_p2, %p494_p11 }
 0x185   : > { %504 = shalt.err (!%p501_p3)
}
 0x186   : > { %397 = dma.vmem_to_hbm [thread:$0]  (%p639_p6), %s676_s10, 16, %s674_s13, %s308_s0  }
 0x187 PF: > { %p403_p4 = scmp.ge.s32.totalorder %s541_s20, 2  ;;  %s332_s30 = sand.u32 1, %s529_s18  }
 0x188   : > { %s333_s9 = scalar_lea.sflag [#allocation7], %s332_s30 }
 0x189   : > { %p400_p5 = pnand %p403_p4, %p643_p7 }
 0x18b   : > { %524 = dma.done.wait (!%p400_p5), %s333_s9, 16  }
 0x18c   : > { %526 = vsyncadd (!%p400_p5), %s333_s9, 4294967280  ;;  %p32_p8 = scmp.ge.s32.totalorder %s626_s23, 18   ;;  %s728_s18 = smov %s533_s19 }
 0x18d   : > { %s729_s19 = smov %s537_s2  ;;  %s730_s2 = smov %s637_s26 }
 0x18e   : > { %s731_s20 = smov %s626_s23  ;;  %34 = sbr.rel (!%p32_p8) target bundleno = 38 (0x26), region = 81 }
 0x195   :  { %337 = vsyncpa [#allocation7], 1 }
 0x196   :  { %339 = vsyncpa [#allocation7 + $0x1], 1 }

</bundles_post_ra>
